<compile_context>
chip_gen: v5e
topology: v5e:2x2
jax: 0.10.0
libtpu: 0.0.40
codegen_flags: <defaults>
</compile_context>

<pallas_src>
import functools

import jax
import jax.numpy as jnp
from jax.experimental import pallas as pl
from jax.experimental.pallas import tpu as pltpu

LANE = 128  # TPU lane width; all feature dims are padded to this


# ----------------------------------------------------------------------------
# Fused Pallas kernel: all GraphConv+ReLU layers + pooled head, one batch/step
# ----------------------------------------------------------------------------
def _fused_gcn_kernel(num_layers, a_ref, x_ref, p_ref, w_ref, b_ref, o_ref):
    """Per grid step (one graph batch):
       for each layer: x = relu(x @ Wr + (A @ x) @ Wn + b)   (two accumulating dots)
       then pooled = P @ x ; h = relu(pooled @ Wd + bd) ; out = h @ Wmu + bmu.
    """
    a = a_ref[0]                       # (N, N)   bf16 dense adjacency
    xb = x_ref[0]                      # (N, 128) bf16 lane-padded node features
    x32 = xb.astype(jnp.float32)

    for l in range(num_layers):        # static unroll (L=6)
        agg = jnp.dot(a, xb, preferred_element_type=jnp.float32)          # (N, 128) f32
        out = (jnp.dot(xb, w_ref[l, 0], preferred_element_type=jnp.float32)
               + jnp.dot(agg.astype(jnp.bfloat16), w_ref[l, 1],
                         preferred_element_type=jnp.float32)
               + b_ref[l])                                                 # f32 bias add
        x32 = jnp.maximum(out, 0.0)                                        # f32 relu
        xb = x32.astype(jnp.bfloat16)                                      # bf16 for MXU

    # head: global_mean_pool -> dense -> relu -> fc_mu (lane-padded output slab)
    pooled = jnp.dot(p_ref[0], x32, preferred_element_type=jnp.float32)    # (Gp, 128) f32
    h = jnp.maximum(
        jnp.dot(pooled.astype(jnp.bfloat16), w_ref[num_layers, 0],
                preferred_element_type=jnp.float32) + b_ref[num_layers],
        0.0)
    o_ref[0] = (jnp.dot(h.astype(jnp.bfloat16), w_ref[num_layers, 1],
                        preferred_element_type=jnp.float32)
                + b_ref[num_layers + 1])


def fused_forward(a, x_p, pool_p, w_all, b_all):
    """a: (B,N,N) bf16, x_p: (B,N,128) bf16, pool_p: (B,Gp,N) f32,
       w_all: (L+1,2,128,128) bf16, b_all: (L+2,1,128) f32 -> (B,Gp,128) f32."""
    B, N, _ = a.shape
    g_pad = pool_p.shape[1]
    num_layers = w_all.shape[0] - 1
    kernel = functools.partial(_fused_gcn_kernel, num_layers)
    return pl.pallas_call(
        kernel,
        out_shape=jax.ShapeDtypeStruct((B, g_pad, LANE), jnp.float32),
        grid=(B,),
        in_specs=[
            pl.BlockSpec((1, N, N), lambda b: (b, 0, 0)),        # adjacency (per batch)
            pl.BlockSpec((1, N, LANE), lambda b: (b, 0, 0)),     # node features
            pl.BlockSpec((1, g_pad, N), lambda b: (b, 0, 0)),    # mean-pool matrix
            pl.BlockSpec(w_all.shape, lambda b: (0, 0, 0, 0)),   # all weights, resident
            pl.BlockSpec(b_all.shape, lambda b: (0, 0, 0)),      # all biases, resident
        ],
        out_specs=pl.BlockSpec((1, g_pad, LANE), lambda b: (b, 0, 0)),
        compiler_params=pltpu.CompilerParams(
            dimension_semantics=("parallel",)),
    )(a, x_p, pool_p, w_all, b_all)


# ----------------------------------------------------------------------------
# Parameter prep (one-time, outside the jit'd forward) and model wrapper
# ----------------------------------------------------------------------------
def _pad_to(arr, shape):
    pads = [(0, s - d) for d, s in zip(arr.shape, shape)]
    return jnp.pad(arr, pads)


def init_params(key, num_node_features, hidden_dims, num_layers):
    """Deterministic synthetic parameters matching GCNNet_mse.__init__ shapes.
    NOTE: weights stored as (in_f, out_f) and applied as x @ W; real PyTorch
    checkpoints store (out_f, in_f) and would need a transpose before packing."""
    params = {"convs": []}
    for i in range(len(hidden_dims)):
        for j in range(num_layers[i]):
            if i == 0 and j == 0:
                in_f = num_node_features
            elif j == 0:
                in_f = hidden_dims[i - 1]
            else:
                in_f = hidden_dims[i]
            out_f = hidden_dims[i]
            key, k1, k2, k3 = jax.random.split(key, 4)
            w_root = 0.1 * jax.random.normal(k1, (in_f, out_f), jnp.float32)
            w_rel = 0.1 * jax.random.normal(k2, (in_f, out_f), jnp.float32)
            b = 0.1 * jax.random.normal(k3, (1, out_f), jnp.float32)
            params["convs"].append((w_root, w_rel, b))
    h = hidden_dims[-1]
    key, k1, k2, k3, k4 = jax.random.split(key, 5)
    params["dense_w"] = 0.1 * jax.random.normal(k1, (h, h), jnp.float32)
    params["dense_b"] = 0.1 * jax.random.normal(k2, (1, h), jnp.float32)
    params["mu_w"] = 0.1 * jax.random.normal(k3, (h, 1), jnp.float32)
    params["mu_b"] = 0.1 * jax.random.normal(k4, (1, 1), jnp.float32)
    return params


def prepare_params(params):
    """Pad + pack all weights/biases once; cached outside the jit'd forward."""
    w_list, b_list = [], []
    for (w_root, w_rel, b) in params["convs"]:
        wr = _pad_to(w_root, (LANE, LANE))
        wn = _pad_to(w_rel, (LANE, LANE))
        w_list.append(jnp.stack([wr, wn]))              # (2, 128, 128)
        b_list.append(_pad_to(b, (1, LANE)))            # (1, 128)
    wd = _pad_to(params["dense_w"], (LANE, LANE))
    wmu = _pad_to(params["mu_w"], (LANE, LANE))         # real output in column 0
    w_list.append(jnp.stack([wd, wmu]))                 # head weights share the slab
    b_list.append(_pad_to(params["dense_b"], (1, LANE)))
    b_list.append(_pad_to(params["mu_b"], (1, LANE)))
    w_all = jnp.stack(w_list).astype(jnp.bfloat16)      # (L+1, 2, 128, 128) bf16
    b_all = jnp.stack(b_list).astype(jnp.float32)       # (L+2, 1, 128) f32
    return {"w_all": jax.device_put(w_all), "b_all": jax.device_put(b_all)}


def gcn_forward(x, adj, pool, packed):
    """x: (B,N,F) f32, adj: (B,N,N) f32 edge counts, pool: (B,G,N) f32 mean-pool."""
    # TODO(synk): hp['use_batch_norm'] is False here; the BatchNorm1d branch
    # (train-mode batch statistics) is not implemented.
    B, n, _ = x.shape
    g = pool.shape[1]
    g_pad = ((g + 7) // 8) * 8

    # lane-pad node features to 128 and cast MXU operands to bf16 (A holds small
    # integer edge counts -> exact in bf16); pool stays f32 for exact mean weights.
    x_p = _pad_to(x.astype(jnp.float32), (B, n, LANE)).astype(jnp.bfloat16)
    a = adj.astype(jnp.bfloat16)
    pool_p = _pad_to(pool.astype(jnp.float32), (B, g_pad, n))

    out = fused_forward(a, x_p, pool_p, packed["w_all"], packed["b_all"])
    return out[:, :g, 0]                                # .squeeze(-1), per batch


def build_graph(key, num_nodes, num_graphs, num_edges):
    """Deterministic synthetic batched graph (dense adjacency + mean-pool matrix)."""
    nodes_per_graph = num_nodes // num_graphs
    batch = jnp.repeat(jnp.arange(num_graphs), nodes_per_graph)

    k1, k2 = jax.random.split(key)
    src_local = jax.random.randint(k1, (num_edges,), 0, nodes_per_graph)
    dst_local = jax.random.randint(k2, (num_edges,), 0, nodes_per_graph)
    graph_of_edge = jnp.arange(num_edges) % num_graphs
    src = graph_of_edge * nodes_per_graph + src_local
    dst = graph_of_edge * nodes_per_graph + dst_local
    edge_index = jnp.stack([src, dst])  # (2, E), message src -> dst

    # A[i, j] = #edges j -> i  so that A @ X sums incoming neighbor features
    adj = jnp.zeros((num_nodes, num_nodes), jnp.float32).at[dst, src].add(1.0)

    one_hot = (batch[None, :] == jnp.arange(num_graphs)[:, None]).astype(jnp.float32)
    counts = jnp.sum(one_hot, axis=1, keepdims=True)
    pool = one_hot / counts  # (G, N) mean-pool matrix
    return edge_index, adj, pool


if __name__ == "__main__":
    NUM_NODE_FEATURES = 16
    NUM_NODES = 32        # nodes per graph batch
    NUM_GRAPHS = 4        # graphs per batch (mean-pool groups)
    NUM_EDGES = 64
    NUM_BATCHES = 4       # batch grid axis of the kernel

    # hp: 6 hidden dims of 32, one layer each, no batch norm
    hidden_dims = [32] * 6
    num_layers = [1] * 6

    key = jax.random.PRNGKey(0)
    k_x, k_g, k_p = jax.random.split(key, 3)

    x = jax.random.normal(
        k_x, (NUM_BATCHES, NUM_NODES, NUM_NODE_FEATURES), jnp.float32)

    adjs, pools = [], []
    for kb in jax.random.split(k_g, NUM_BATCHES):
        _, adj_b, pool_b = build_graph(kb, NUM_NODES, NUM_GRAPHS, NUM_EDGES)
        adjs.append(adj_b)
        pools.append(pool_b)
    adj = jnp.stack(adjs)     # (B, N, N)
    pool = jnp.stack(pools)   # (B, G, N)

    params = init_params(k_p, NUM_NODE_FEATURES, hidden_dims, num_layers)
    packed = prepare_params(params)            # one-time pack, outside the jit

    fwd = jax.jit(gcn_forward)
    mu = fwd(x, adj, pool, packed)
    mu = jax.block_until_ready(mu)
    assert mu.shape == (NUM_BATCHES, NUM_GRAPHS), mu.shape
    assert bool(jnp.all(jnp.isfinite(mu)))
    print("KERNEL_OK")
</pallas_src>

<mosaic_0001>
module attributes {stable_mosaic.version = 11 : i64} {
  func.func @_fused_gcn_kernel(%arg0: i32, %arg1: memref<1x32x32xbf16, #tpu.memory_space<vmem>>, %arg2: memref<1x32x128xbf16, #tpu.memory_space<vmem>>, %arg3: memref<1x8x32xf32, #tpu.memory_space<vmem>>, %arg4: memref<7x2x128x128xbf16, #tpu.memory_space<vmem>>, %arg5: memref<8x1x128xf32, #tpu.memory_space<vmem>>, %arg6: memref<1x8x128xf32, #tpu.memory_space<vmem>>) attributes {dimension_semantics = [#tpu.dimension_semantics<parallel>], iteration_bounds = array<i64: 4>, scalar_prefetch = 0 : i64, scratch_operands = 0 : i64, tpu.core_type = #tpu.core_type<tc>, window_params = [{transform_indices = @transform_0, window_bounds = array<i64: 1, 32, 32>}, {transform_indices = @transform_1, window_bounds = array<i64: 1, 32, 128>}, {transform_indices = @transform_2, window_bounds = array<i64: 1, 8, 32>}, {pipeline_mode = #tpu.pipeline_mode<synchronous>, transform_indices = @transform_3, window_bounds = array<i64: 7, 2, 128, 128>}, {pipeline_mode = #tpu.pipeline_mode<synchronous>, transform_indices = @transform_4, window_bounds = array<i64: 8, 1, 128>}, {transform_indices = @transform_5, window_bounds = array<i64: 1, 8, 128>}]} {
    %c0 = arith.constant 0 : index
    %c0_0 = arith.constant 0 : index
    %c0_1 = arith.constant 0 : index
    %0 = vector.load %arg1[%c0, %c0_0, %c0_1] : memref<1x32x32xbf16, #tpu.memory_space<vmem>>, vector<1x32x32xbf16>
    %1 = vector.shape_cast %0 : vector<1x32x32xbf16> to vector<32x32xbf16>
    %c0_2 = arith.constant 0 : index
    %c0_3 = arith.constant 0 : index
    %c0_4 = arith.constant 0 : index
    %2 = vector.load %arg2[%c0_2, %c0_3, %c0_4] : memref<1x32x128xbf16, #tpu.memory_space<vmem>>, vector<1x32x128xbf16>
    %3 = vector.shape_cast %2 : vector<1x32x128xbf16> to vector<32x128xbf16>
    %cst = arith.constant dense<0.000000e+00> : vector<32x128xf32>
    %4 = tpu.matmul %1, %3, %cst {dimension_numbers = #tpu.dot_dimension_numbers<[1], [0], [0], [1], [0, 0, 1, 1], [], []>} : vector<32x32xbf16>, vector<32x128xbf16>, vector<32x128xf32> -> vector<32x128xf32>
    %c0_5 = arith.constant 0 : index
    %c0_6 = arith.constant 0 : index
    %c0_7 = arith.constant 0 : index
    %c0_8 = arith.constant 0 : index
    %5 = vector.load %arg4[%c0_5, %c0_6, %c0_7, %c0_8] : memref<7x2x128x128xbf16, #tpu.memory_space<vmem>>, vector<1x1x128x128xbf16>
    %6 = vector.shape_cast %5 : vector<1x1x128x128xbf16> to vector<128x128xbf16>
    %cst_9 = arith.constant dense<0.000000e+00> : vector<32x128xf32>
    %7 = tpu.matmul %3, %6, %cst_9 {dimension_numbers = #tpu.dot_dimension_numbers<[1], [0], [0], [1], [0, 0, 1, 1], [], []>} : vector<32x128xbf16>, vector<128x128xbf16>, vector<32x128xf32> -> vector<32x128xf32>
    %8 = arith.truncf %4 : vector<32x128xf32> to vector<32x128xbf16>
    %c0_10 = arith.constant 0 : index
    %c1 = arith.constant 1 : index
    %c0_11 = arith.constant 0 : index
    %c0_12 = arith.constant 0 : index
    %9 = vector.load %arg4[%c0_10, %c1, %c0_11, %c0_12] : memref<7x2x128x128xbf16, #tpu.memory_space<vmem>>, vector<1x1x128x128xbf16>
    %10 = vector.shape_cast %9 : vector<1x1x128x128xbf16> to vector<128x128xbf16>
    %cst_13 = arith.constant dense<0.000000e+00> : vector<32x128xf32>
    %11 = tpu.matmul %8, %10, %cst_13 {dimension_numbers = #tpu.dot_dimension_numbers<[1], [0], [0], [1], [0, 0, 1, 1], [], []>} : vector<32x128xbf16>, vector<128x128xbf16>, vector<32x128xf32> -> vector<32x128xf32>
    %12 = arith.addf %7, %11 : vector<32x128xf32>
    %c0_14 = arith.constant 0 : index
    %c0_15 = arith.constant 0 : index
    %c0_16 = arith.constant 0 : index
    %13 = vector.load %arg5[%c0_14, %c0_15, %c0_16] : memref<8x1x128xf32, #tpu.memory_space<vmem>>, vector<1x1x128xf32>
    %14 = vector.shape_cast %13 : vector<1x1x128xf32> to vector<1x128xf32>
    %15 = vector.broadcast %14 : vector<1x128xf32> to vector<32x128xf32>
    %16 = arith.addf %12, %15 : vector<32x128xf32>
    %cst_17 = arith.constant 0.000000e+00 : f32
    %17 = vector.broadcast %cst_17 : f32 to vector<32x128xf32>
    %18 = arith.maximumf %16, %17 : vector<32x128xf32>
    %19 = arith.truncf %18 : vector<32x128xf32> to vector<32x128xbf16>
    %cst_18 = arith.constant dense<0.000000e+00> : vector<32x128xf32>
    %20 = tpu.matmul %1, %19, %cst_18 {dimension_numbers = #tpu.dot_dimension_numbers<[1], [0], [0], [1], [0, 0, 1, 1], [], []>} : vector<32x32xbf16>, vector<32x128xbf16>, vector<32x128xf32> -> vector<32x128xf32>
    %c1_19 = arith.constant 1 : index
    %c0_20 = arith.constant 0 : index
    %c0_21 = arith.constant 0 : index
    %c0_22 = arith.constant 0 : index
    %21 = vector.load %arg4[%c1_19, %c0_20, %c0_21, %c0_22] : memref<7x2x128x128xbf16, #tpu.memory_space<vmem>>, vector<1x1x128x128xbf16>
    %22 = vector.shape_cast %21 : vector<1x1x128x128xbf16> to vector<128x128xbf16>
    %cst_23 = arith.constant dense<0.000000e+00> : vector<32x128xf32>
    %23 = tpu.matmul %19, %22, %cst_23 {dimension_numbers = #tpu.dot_dimension_numbers<[1], [0], [0], [1], [0, 0, 1, 1], [], []>} : vector<32x128xbf16>, vector<128x128xbf16>, vector<32x128xf32> -> vector<32x128xf32>
    %24 = arith.truncf %20 : vector<32x128xf32> to vector<32x128xbf16>
    %c1_24 = arith.constant 1 : index
    %c1_25 = arith.constant 1 : index
    %c0_26 = arith.constant 0 : index
    %c0_27 = arith.constant 0 : index
    %25 = vector.load %arg4[%c1_24, %c1_25, %c0_26, %c0_27] : memref<7x2x128x128xbf16, #tpu.memory_space<vmem>>, vector<1x1x128x128xbf16>
    %26 = vector.shape_cast %25 : vector<1x1x128x128xbf16> to vector<128x128xbf16>
    %cst_28 = arith.constant dense<0.000000e+00> : vector<32x128xf32>
    %27 = tpu.matmul %24, %26, %cst_28 {dimension_numbers = #tpu.dot_dimension_numbers<[1], [0], [0], [1], [0, 0, 1, 1], [], []>} : vector<32x128xbf16>, vector<128x128xbf16>, vector<32x128xf32> -> vector<32x128xf32>
    %28 = arith.addf %23, %27 : vector<32x128xf32>
    %c1_29 = arith.constant 1 : index
    %c0_30 = arith.constant 0 : index
    %c0_31 = arith.constant 0 : index
    %29 = vector.load %arg5[%c1_29, %c0_30, %c0_31] : memref<8x1x128xf32, #tpu.memory_space<vmem>>, vector<1x1x128xf32>
    %30 = vector.shape_cast %29 : vector<1x1x128xf32> to vector<1x128xf32>
    %31 = vector.broadcast %30 : vector<1x128xf32> to vector<32x128xf32>
    %32 = arith.addf %28, %31 : vector<32x128xf32>
    %cst_32 = arith.constant 0.000000e+00 : f32
    %33 = vector.broadcast %cst_32 : f32 to vector<32x128xf32>
    %34 = arith.maximumf %32, %33 : vector<32x128xf32>
    %35 = arith.truncf %34 : vector<32x128xf32> to vector<32x128xbf16>
    %cst_33 = arith.constant dense<0.000000e+00> : vector<32x128xf32>
    %36 = tpu.matmul %1, %35, %cst_33 {dimension_numbers = #tpu.dot_dimension_numbers<[1], [0], [0], [1], [0, 0, 1, 1], [], []>} : vector<32x32xbf16>, vector<32x128xbf16>, vector<32x128xf32> -> vector<32x128xf32>
    %c2 = arith.constant 2 : index
    %c0_34 = arith.constant 0 : index
    %c0_35 = arith.constant 0 : index
    %c0_36 = arith.constant 0 : index
    %37 = vector.load %arg4[%c2, %c0_34, %c0_35, %c0_36] : memref<7x2x128x128xbf16, #tpu.memory_space<vmem>>, vector<1x1x128x128xbf16>
    %38 = vector.shape_cast %37 : vector<1x1x128x128xbf16> to vector<128x128xbf16>
    %cst_37 = arith.constant dense<0.000000e+00> : vector<32x128xf32>
    %39 = tpu.matmul %35, %38, %cst_37 {dimension_numbers = #tpu.dot_dimension_numbers<[1], [0], [0], [1], [0, 0, 1, 1], [], []>} : vector<32x128xbf16>, vector<128x128xbf16>, vector<32x128xf32> -> vector<32x128xf32>
    %40 = arith.truncf %36 : vector<32x128xf32> to vector<32x128xbf16>
    %c2_38 = arith.constant 2 : index
    %c1_39 = arith.constant 1 : index
    %c0_40 = arith.constant 0 : index
    %c0_41 = arith.constant 0 : index
    %41 = vector.load %arg4[%c2_38, %c1_39, %c0_40, %c0_41] : memref<7x2x128x128xbf16, #tpu.memory_space<vmem>>, vector<1x1x128x128xbf16>
    %42 = vector.shape_cast %41 : vector<1x1x128x128xbf16> to vector<128x128xbf16>
    %cst_42 = arith.constant dense<0.000000e+00> : vector<32x128xf32>
    %43 = tpu.matmul %40, %42, %cst_42 {dimension_numbers = #tpu.dot_dimension_numbers<[1], [0], [0], [1], [0, 0, 1, 1], [], []>} : vector<32x128xbf16>, vector<128x128xbf16>, vector<32x128xf32> -> vector<32x128xf32>
    %44 = arith.addf %39, %43 : vector<32x128xf32>
    %c2_43 = arith.constant 2 : index
    %c0_44 = arith.constant 0 : index
    %c0_45 = arith.constant 0 : index
    %45 = vector.load %arg5[%c2_43, %c0_44, %c0_45] : memref<8x1x128xf32, #tpu.memory_space<vmem>>, vector<1x1x128xf32>
    %46 = vector.shape_cast %45 : vector<1x1x128xf32> to vector<1x128xf32>
    %47 = vector.broadcast %46 : vector<1x128xf32> to vector<32x128xf32>
    %48 = arith.addf %44, %47 : vector<32x128xf32>
    %cst_46 = arith.constant 0.000000e+00 : f32
    %49 = vector.broadcast %cst_46 : f32 to vector<32x128xf32>
    %50 = arith.maximumf %48, %49 : vector<32x128xf32>
    %51 = arith.truncf %50 : vector<32x128xf32> to vector<32x128xbf16>
    %cst_47 = arith.constant dense<0.000000e+00> : vector<32x128xf32>
    %52 = tpu.matmul %1, %51, %cst_47 {dimension_numbers = #tpu.dot_dimension_numbers<[1], [0], [0], [1], [0, 0, 1, 1], [], []>} : vector<32x32xbf16>, vector<32x128xbf16>, vector<32x128xf32> -> vector<32x128xf32>
    %c3 = arith.constant 3 : index
    %c0_48 = arith.constant 0 : index
    %c0_49 = arith.constant 0 : index
    %c0_50 = arith.constant 0 : index
    %53 = vector.load %arg4[%c3, %c0_48, %c0_49, %c0_50] : memref<7x2x128x128xbf16, #tpu.memory_space<vmem>>, vector<1x1x128x128xbf16>
    %54 = vector.shape_cast %53 : vector<1x1x128x128xbf16> to vector<128x128xbf16>
    %cst_51 = arith.constant dense<0.000000e+00> : vector<32x128xf32>
    %55 = tpu.matmul %51, %54, %cst_51 {dimension_numbers = #tpu.dot_dimension_numbers<[1], [0], [0], [1], [0, 0, 1, 1], [], []>} : vector<32x128xbf16>, vector<128x128xbf16>, vector<32x128xf32> -> vector<32x128xf32>
    %56 = arith.truncf %52 : vector<32x128xf32> to vector<32x128xbf16>
    %c3_52 = arith.constant 3 : index
    %c1_53 = arith.constant 1 : index
    %c0_54 = arith.constant 0 : index
    %c0_55 = arith.constant 0 : index
    %57 = vector.load %arg4[%c3_52, %c1_53, %c0_54, %c0_55] : memref<7x2x128x128xbf16, #tpu.memory_space<vmem>>, vector<1x1x128x128xbf16>
    %58 = vector.shape_cast %57 : vector<1x1x128x128xbf16> to vector<128x128xbf16>
    %cst_56 = arith.constant dense<0.000000e+00> : vector<32x128xf32>
    %59 = tpu.matmul %56, %58, %cst_56 {dimension_numbers = #tpu.dot_dimension_numbers<[1], [0], [0], [1], [0, 0, 1, 1], [], []>} : vector<32x128xbf16>, vector<128x128xbf16>, vector<32x128xf32> -> vector<32x128xf32>
    %60 = arith.addf %55, %59 : vector<32x128xf32>
    %c3_57 = arith.constant 3 : index
    %c0_58 = arith.constant 0 : index
    %c0_59 = arith.constant 0 : index
    %61 = vector.load %arg5[%c3_57, %c0_58, %c0_59] : memref<8x1x128xf32, #tpu.memory_space<vmem>>, vector<1x1x128xf32>
    %62 = vector.shape_cast %61 : vector<1x1x128xf32> to vector<1x128xf32>
    %63 = vector.broadcast %62 : vector<1x128xf32> to vector<32x128xf32>
    %64 = arith.addf %60, %63 : vector<32x128xf32>
    %cst_60 = arith.constant 0.000000e+00 : f32
    %65 = vector.broadcast %cst_60 : f32 to vector<32x128xf32>
    %66 = arith.maximumf %64, %65 : vector<32x128xf32>
    %67 = arith.truncf %66 : vector<32x128xf32> to vector<32x128xbf16>
    %cst_61 = arith.constant dense<0.000000e+00> : vector<32x128xf32>
    %68 = tpu.matmul %1, %67, %cst_61 {dimension_numbers = #tpu.dot_dimension_numbers<[1], [0], [0], [1], [0, 0, 1, 1], [], []>} : vector<32x32xbf16>, vector<32x128xbf16>, vector<32x128xf32> -> vector<32x128xf32>
    %c4 = arith.constant 4 : index
    %c0_62 = arith.constant 0 : index
    %c0_63 = arith.constant 0 : index
    %c0_64 = arith.constant 0 : index
    %69 = vector.load %arg4[%c4, %c0_62, %c0_63, %c0_64] : memref<7x2x128x128xbf16, #tpu.memory_space<vmem>>, vector<1x1x128x128xbf16>
    %70 = vector.shape_cast %69 : vector<1x1x128x128xbf16> to vector<128x128xbf16>
    %cst_65 = arith.constant dense<0.000000e+00> : vector<32x128xf32>
    %71 = tpu.matmul %67, %70, %cst_65 {dimension_numbers = #tpu.dot_dimension_numbers<[1], [0], [0], [1], [0, 0, 1, 1], [], []>} : vector<32x128xbf16>, vector<128x128xbf16>, vector<32x128xf32> -> vector<32x128xf32>
    %72 = arith.truncf %68 : vector<32x128xf32> to vector<32x128xbf16>
    %c4_66 = arith.constant 4 : index
    %c1_67 = arith.constant 1 : index
    %c0_68 = arith.constant 0 : index
    %c0_69 = arith.constant 0 : index
    %73 = vector.load %arg4[%c4_66, %c1_67, %c0_68, %c0_69] : memref<7x2x128x128xbf16, #tpu.memory_space<vmem>>, vector<1x1x128x128xbf16>
    %74 = vector.shape_cast %73 : vector<1x1x128x128xbf16> to vector<128x128xbf16>
    %cst_70 = arith.constant dense<0.000000e+00> : vector<32x128xf32>
    %75 = tpu.matmul %72, %74, %cst_70 {dimension_numbers = #tpu.dot_dimension_numbers<[1], [0], [0], [1], [0, 0, 1, 1], [], []>} : vector<32x128xbf16>, vector<128x128xbf16>, vector<32x128xf32> -> vector<32x128xf32>
    %76 = arith.addf %71, %75 : vector<32x128xf32>
    %c4_71 = arith.constant 4 : index
    %c0_72 = arith.constant 0 : index
    %c0_73 = arith.constant 0 : index
    %77 = vector.load %arg5[%c4_71, %c0_72, %c0_73] : memref<8x1x128xf32, #tpu.memory_space<vmem>>, vector<1x1x128xf32>
    %78 = vector.shape_cast %77 : vector<1x1x128xf32> to vector<1x128xf32>
    %79 = vector.broadcast %78 : vector<1x128xf32> to vector<32x128xf32>
    %80 = arith.addf %76, %79 : vector<32x128xf32>
    %cst_74 = arith.constant 0.000000e+00 : f32
    %81 = vector.broadcast %cst_74 : f32 to vector<32x128xf32>
    %82 = arith.maximumf %80, %81 : vector<32x128xf32>
    %83 = arith.truncf %82 : vector<32x128xf32> to vector<32x128xbf16>
    %cst_75 = arith.constant dense<0.000000e+00> : vector<32x128xf32>
    %84 = tpu.matmul %1, %83, %cst_75 {dimension_numbers = #tpu.dot_dimension_numbers<[1], [0], [0], [1], [0, 0, 1, 1], [], []>} : vector<32x32xbf16>, vector<32x128xbf16>, vector<32x128xf32> -> vector<32x128xf32>
    %c5 = arith.constant 5 : index
    %c0_76 = arith.constant 0 : index
    %c0_77 = arith.constant 0 : index
    %c0_78 = arith.constant 0 : index
    %85 = vector.load %arg4[%c5, %c0_76, %c0_77, %c0_78] : memref<7x2x128x128xbf16, #tpu.memory_space<vmem>>, vector<1x1x128x128xbf16>
    %86 = vector.shape_cast %85 : vector<1x1x128x128xbf16> to vector<128x128xbf16>
    %cst_79 = arith.constant dense<0.000000e+00> : vector<32x128xf32>
    %87 = tpu.matmul %83, %86, %cst_79 {dimension_numbers = #tpu.dot_dimension_numbers<[1], [0], [0], [1], [0, 0, 1, 1], [], []>} : vector<32x128xbf16>, vector<128x128xbf16>, vector<32x128xf32> -> vector<32x128xf32>
    %88 = arith.truncf %84 : vector<32x128xf32> to vector<32x128xbf16>
    %c5_80 = arith.constant 5 : index
    %c1_81 = arith.constant 1 : index
    %c0_82 = arith.constant 0 : index
    %c0_83 = arith.constant 0 : index
    %89 = vector.load %arg4[%c5_80, %c1_81, %c0_82, %c0_83] : memref<7x2x128x128xbf16, #tpu.memory_space<vmem>>, vector<1x1x128x128xbf16>
    %90 = vector.shape_cast %89 : vector<1x1x128x128xbf16> to vector<128x128xbf16>
    %cst_84 = arith.constant dense<0.000000e+00> : vector<32x128xf32>
    %91 = tpu.matmul %88, %90, %cst_84 {dimension_numbers = #tpu.dot_dimension_numbers<[1], [0], [0], [1], [0, 0, 1, 1], [], []>} : vector<32x128xbf16>, vector<128x128xbf16>, vector<32x128xf32> -> vector<32x128xf32>
    %92 = arith.addf %87, %91 : vector<32x128xf32>
    %c5_85 = arith.constant 5 : index
    %c0_86 = arith.constant 0 : index
    %c0_87 = arith.constant 0 : index
    %93 = vector.load %arg5[%c5_85, %c0_86, %c0_87] : memref<8x1x128xf32, #tpu.memory_space<vmem>>, vector<1x1x128xf32>
    %94 = vector.shape_cast %93 : vector<1x1x128xf32> to vector<1x128xf32>
    %95 = vector.broadcast %94 : vector<1x128xf32> to vector<32x128xf32>
    %96 = arith.addf %92, %95 : vector<32x128xf32>
    %cst_88 = arith.constant 0.000000e+00 : f32
    %97 = vector.broadcast %cst_88 : f32 to vector<32x128xf32>
    %98 = arith.maximumf %96, %97 : vector<32x128xf32>
    %c0_89 = arith.constant 0 : index
    %c0_90 = arith.constant 0 : index
    %c0_91 = arith.constant 0 : index
    %99 = vector.load %arg3[%c0_89, %c0_90, %c0_91] : memref<1x8x32xf32, #tpu.memory_space<vmem>>, vector<1x8x32xf32>
    %100 = vector.shape_cast %99 : vector<1x8x32xf32> to vector<8x32xf32>
    %cst_92 = arith.constant dense<0.000000e+00> : vector<8x128xf32>
    %101 = tpu.matmul %100, %98, %cst_92 {dimension_numbers = #tpu.dot_dimension_numbers<[1], [0], [0], [1], [0, 0, 1, 1], [], []>} : vector<8x32xf32>, vector<32x128xf32>, vector<8x128xf32> -> vector<8x128xf32>
    %102 = arith.truncf %101 : vector<8x128xf32> to vector<8x128xbf16>
    %c6 = arith.constant 6 : index
    %c0_93 = arith.constant 0 : index
    %c0_94 = arith.constant 0 : index
    %c0_95 = arith.constant 0 : index
    %103 = vector.load %arg4[%c6, %c0_93, %c0_94, %c0_95] : memref<7x2x128x128xbf16, #tpu.memory_space<vmem>>, vector<1x1x128x128xbf16>
    %104 = vector.shape_cast %103 : vector<1x1x128x128xbf16> to vector<128x128xbf16>
    %cst_96 = arith.constant dense<0.000000e+00> : vector<8x128xf32>
    %105 = tpu.matmul %102, %104, %cst_96 {dimension_numbers = #tpu.dot_dimension_numbers<[1], [0], [0], [1], [0, 0, 1, 1], [], []>} : vector<8x128xbf16>, vector<128x128xbf16>, vector<8x128xf32> -> vector<8x128xf32>
    %c6_97 = arith.constant 6 : index
    %c0_98 = arith.constant 0 : index
    %c0_99 = arith.constant 0 : index
    %106 = vector.load %arg5[%c6_97, %c0_98, %c0_99] : memref<8x1x128xf32, #tpu.memory_space<vmem>>, vector<1x1x128xf32>
    %107 = vector.shape_cast %106 : vector<1x1x128xf32> to vector<1x128xf32>
    %108 = vector.broadcast %107 : vector<1x128xf32> to vector<8x128xf32>
    %109 = arith.addf %105, %108 : vector<8x128xf32>
    %cst_100 = arith.constant 0.000000e+00 : f32
    %110 = vector.broadcast %cst_100 : f32 to vector<8x128xf32>
    %111 = arith.maximumf %109, %110 : vector<8x128xf32>
    %112 = arith.truncf %111 : vector<8x128xf32> to vector<8x128xbf16>
    %c6_101 = arith.constant 6 : index
    %c1_102 = arith.constant 1 : index
    %c0_103 = arith.constant 0 : index
    %c0_104 = arith.constant 0 : index
    %113 = vector.load %arg4[%c6_101, %c1_102, %c0_103, %c0_104] : memref<7x2x128x128xbf16, #tpu.memory_space<vmem>>, vector<1x1x128x128xbf16>
    %114 = vector.shape_cast %113 : vector<1x1x128x128xbf16> to vector<128x128xbf16>
    %cst_105 = arith.constant dense<0.000000e+00> : vector<8x128xf32>
    %115 = tpu.matmul %112, %114, %cst_105 {dimension_numbers = #tpu.dot_dimension_numbers<[1], [0], [0], [1], [0, 0, 1, 1], [], []>} : vector<8x128xbf16>, vector<128x128xbf16>, vector<8x128xf32> -> vector<8x128xf32>
    %c7 = arith.constant 7 : index
    %c0_106 = arith.constant 0 : index
    %c0_107 = arith.constant 0 : index
    %116 = vector.load %arg5[%c7, %c0_106, %c0_107] : memref<8x1x128xf32, #tpu.memory_space<vmem>>, vector<1x1x128xf32>
    %117 = vector.shape_cast %116 : vector<1x1x128xf32> to vector<1x128xf32>
    %118 = vector.broadcast %117 : vector<1x128xf32> to vector<8x128xf32>
    %119 = arith.addf %115, %118 : vector<8x128xf32>
    %c0_108 = arith.constant 0 : index
    %c0_109 = arith.constant 0 : index
    %c0_110 = arith.constant 0 : index
    %120 = vector.load %arg6[%c0_108, %c0_109, %c0_110] : memref<1x8x128xf32, #tpu.memory_space<vmem>>, vector<1x8x128xf32>
    %121 = vector.shape_cast %120 : vector<1x8x128xf32> to vector<8x128xf32>
    %122 = vector.shape_cast %119 : vector<8x128xf32> to vector<1x8x128xf32>
    tpu.vector_store %arg6[%c0_108, %c0_109, %c0_110], %122 {strides = array<i32>} : memref<1x8x128xf32, #tpu.memory_space<vmem>>, vector<1x8x128xf32>,
    return
  }
  func.func @transform_0(%arg0: i32) -> (i32, i32, i32) {
    %c0_i32 = arith.constant 0 : i32
    %c0_i32_0 = arith.constant 0 : i32
    %c0_i32_1 = arith.constant 0 : i32
    return %arg0, %c0_i32, %c0_i32_0 : i32, i32, i32
  }
  func.func @transform_1(%arg0: i32) -> (i32, i32, i32) {
    %c0_i32 = arith.constant 0 : i32
    %c0_i32_0 = arith.constant 0 : i32
    %c0_i32_1 = arith.constant 0 : i32
    return %arg0, %c0_i32, %c0_i32_0 : i32, i32, i32
  }
  func.func @transform_2(%arg0: i32) -> (i32, i32, i32) {
    %c0_i32 = arith.constant 0 : i32
    %c0_i32_0 = arith.constant 0 : i32
    %c0_i32_1 = arith.constant 0 : i32
    return %arg0, %c0_i32, %c0_i32_0 : i32, i32, i32
  }
  func.func @transform_3(%arg0: i32) -> (i32, i32, i32, i32) {
    %c0_i32 = arith.constant 0 : i32
    %c0_i32_0 = arith.constant 0 : i32
    %c0_i32_1 = arith.constant 0 : i32
    %c0_i32_2 = arith.constant 0 : i32
    %c0_i32_3 = arith.constant 0 : i32
    return %c0_i32, %c0_i32_0, %c0_i32_1, %c0_i32_2 : i32, i32, i32, i32
  }
  func.func @transform_4(%arg0: i32) -> (i32, i32, i32) {
    %c0_i32 = arith.constant 0 : i32
    %c0_i32_0 = arith.constant 0 : i32
    %c0_i32_1 = arith.constant 0 : i32
    %c0_i32_2 = arith.constant 0 : i32
    return %c0_i32, %c0_i32_0, %c0_i32_1 : i32, i32, i32
  }
  func.func @transform_5(%arg0: i32) -> (i32, i32, i32) {
    %c0_i32 = arith.constant 0 : i32
    %c0_i32_0 = arith.constant 0 : i32
    %c0_i32_1 = arith.constant 0 : i32
    return %arg0, %c0_i32, %c0_i32_0 : i32, i32, i32
  }
}

</mosaic_0001>

<bundles_post_ra>
// kernel: gcn_forward.1
= control target key start
LH: loop header
LB: loop body
LE: loop exit
PB: predicated region body
PF: predicated region fallthrough
CT: control target
= control target key end

     0   :  { %10 = vsyncpa [#allocation3], 0  ;;  %s2539_s18 = smov 0   ;;  %s2626_s0 = inlined_call_operand.vmem [shape: bf16[4,32,32], index: 0, kind: input, shape index: {}]   ;;  %s2627_s1 = inlined_call_operand.vmem [shape: bf16[4,32,128], index: 1, kind: input, shape index: {}]   ;;  %s2628_s2 = inlined_call_operand.vmem [shape: f32[4,8,32], index: 2, kind: input, shape index: {}]   ;;  %s2629_s3 = inlined_call_operand.hbm [shape: bf16[7,2,128,128], index: 3, kind: input, shape index: {}]   ;;  %s2630_s4 = inlined_call_operand.vmem [shape: f32[8,1,128], index: 4, kind: input, shape index: {}]   ;;  %s2631_s5 = inlined_call_operand.vmem [shape: f32[4,8,128], index: 5, kind: output, shape index: {}]  }
   0x1 LB: > { %s178_s21 = sshll.u32 %s2629_s3, 4  ;;  %s1818_s22 = sadd.s32 4294967295, %s2504_s18   ;;  %s2504_s18 = sphi %s2539_s18, %s16_s18   ;;  %s179_s21 = int_to_ptr.hbm [resolvable:$true] %s178_s21 }
   0x2   : > { %p1820_p0 = scmp.ge.s32.totalorder %s2504_s18, 1  ;;  %p167_p1 = scmp.lt.s32.totalorder %s2504_s18, 5 }
   0x3   : > { %p2443_p2 = scmp.eq.s32.totalorder %s1818_s22, 0  ;;  %s2506_s23 = smov [#allocation2]  }
   0x4   : > { %p168_p3 = pnand %p1820_p0, %p167_p1  ;;  %s180_s24 = sshll.u32 %s2506_s23, 4  ;;  %s181_s24 = int_to_ptr.vmem [resolvable:$true] %s180_s24 }
   0x5   : > { %s2507_s25 = smov 64   ;;  %s2508_s26 = smov 4  }
   0x6   : > { %p2439_p4 = pneg %p168_p3  ;;  %222 = sbr.rel (%p168_p3) target bundleno = 2259 (0x8d3), region = 40 }
   0x8   : > { %p2440_p5 = pnand %p2443_p2, %p2439_p4 }
   0xa   : > { %2442 = dma.hbm_to_vmem [thread:$0]  (!%p2440_p5), %s179_s21, 14336, %s181_s24, [#allocation3], %s2507_s25, %s2507_s25, %s2508_s26  }
   0xb   : > { %2499 = dma.done.wait (%p2443_p2), [#allocation3], 14336  }
   0xc   : > { %2501 = vsyncadd (%p2443_p2), [#allocation3], 4294952960  ;;  %p259_p6 = scmp.lt.s32.totalorder %s1818_s22, 3  ;;  %v2330_v1 = vld [vmem:[#allocation2 + $0x38] sm:$0xff]  ;;  %v2329_v3 = vld [vmem:[#allocation2 + $0x30] sm:$0xff]  ;;  %vm308_vm0 = vcmask 261120  }
   0xd   : > { %484 = vmatpush.bf16.msra.mxu2 %v2330_v1  ;;  %v2338_v4 = vld [vmem:[#allocation2 + $0x78] sm:$0xff]  ;;  %v2328_v6 = vld [vmem:[#allocation2 + $0x28] sm:$0xff]  ;;  %v2337_v7 = vld [vmem:[#allocation2 + $0x70] sm:$0xff] }
   0xe   : > { %s2633_s22 = smov (!%p259_p6, %s1818_s22), 3  ;;  %v2327_v8 = vld [vmem:[#allocation2 + $0x20] sm:$0xff]  ;;  %v2336_v9 = vld [vmem:[#allocation2 + $0x68] sm:$0xff]  ;;  %v2326_v10 = vld [vmem:[#allocation2 + $0x18] sm:$0xff] }
   0xf   : > { %s2317_s27 = sshll.u32 %s2633_s22, 4  ;;  %v2335_v11 = vld [vmem:[#allocation2 + $0x60] sm:$0xff]  ;;  %v2325_v12 = vld [vmem:[#allocation2 + $0x10] sm:$0xff]  ;;  %v2334_v13 = vld [vmem:[#allocation2 + $0x58] sm:$0xff]  ;;  %s1829_s23 = sshll.u32 %s2633_s22, 3 }
  0x10   : > { %s268_s30 = scalar_lea.vmem %s2627_s1, %s2317_s27  ;;  %s263_s8 = scalar_lea.vmem %s2626_s0, %s2317_s27  ;;  %v2324_v15 = vld [vmem:[#allocation2 + $0x8] sm:$0xff]  ;;  %v2323_v16 = vld [vmem:[#allocation2] sm:$0xff]  ;;  %v2333_v17 = vld [vmem:[#allocation2 + $0x50] sm:$0xff] }
  0x11   : > { %v2322_v0 = vld [vmem:[%s268_s30 + $0x8] sm:$0xff]  ;;  %v2321_v2 = vld [vmem:[%s268_s30] sm:$0xff]  ;;  %485 = vmatpush.bf16.msra.mxu2 %v2329_v3  ;;  %v2346_v48 = vld [vmem:[#allocation2 + $0xb8] sm:$0xff]  ;;  %s272_s26 = scalar_lea.vmem %s2628_s2, %s1829_s23 }
  0x12   : > { %321 = vmatpush.bf16.msra.mxu1 %v2322_v0  ;;  %v2559_v5 = vld [vmem:[%s263_s8] sm:$0xff]  ;;  %v2563_v14 = vld [vmem:[%s263_s8 + $0x8] sm:$0xff]  ;;  %v2345_v50 = vld [vmem:[#allocation2 + $0xb0] sm:$0xff]  ;;  %s276_s8 = scalar_lea.vmem %s2631_s5, %s1829_s23 }
  0x13   : > { %v2332_v18 = vld [vmem:[#allocation2 + $0x48] sm:$0xff]  ;;  %v2331_v19 = vld [vmem:[#allocation2 + $0x40] sm:$0xff]  ;;  %v2342_v53 = vld [vmem:[#allocation2 + $0x98] sm:$0xff] }
  0x14   : > { %v2456_v33 = vld [vmem:[%s2630_s4] ss:$0 sm:$0xff]  ;;  %v2344_v51 = vld [vmem:[#allocation2 + $0xa8] sm:$0xff]  ;;  %v2341_v54 = vld [vmem:[#allocation2 + $0x90] sm:$0xff] }
  0x15   : > { %486 = vmatpush.bf16.msra.mxu2 %v2328_v6  ;;  %v2343_v52 = vld [vmem:[#allocation2 + $0xa0] sm:$0xff]  ;;  %v2354_v55 = vld [vmem:[#allocation2 + $0xf8] sm:$0xff]  ;;  %v2340_v56 = vld [vmem:[#allocation2 + $0x88] sm:$0xff] }
  0x16   : > { %322 = vmatpush.bf16.msra.mxu1 %v2321_v2  ;;  %620 = vmatpush.bf16.msra.mxu0 %v2354_v55  ;;  %v2353_v57 = vld [vmem:[#allocation2 + $0xf0] sm:$0xff]  ;;  %v2339_v58 = vld [vmem:[#allocation2 + $0x80] sm:$0xff]  ;;  %v2352_v59 = vld [vmem:[#allocation2 + $0xe8] sm:$0xff] }
  0x17   : > { %v2351_v60 = vld [vmem:[#allocation2 + $0xe0] sm:$0xff]  ;;  %v2350_v61 = vld [vmem:[#allocation2 + $0xd8] sm:$0xff]  ;;  %v2349_v62 = vld [vmem:[#allocation2 + $0xd0] sm:$0xff] }
  0x18   : > { %v2348_v63 = vld [vmem:[#allocation2 + $0xc8] sm:$0xff] }
  0x19   : > { %1847 = vmatmul.msk.bf16.vlgmr.msra.gmra.mxu1 %vm308_vm0, %v2559_v5  ;;  %487 = vmatpush.bf16.msra.mxu2 %v2327_v8 }
  0x1a   : > { %417 = vmatpush.bf16.msrb.mxu1 %v2338_v4  ;;  %621 = vmatpush.bf16.msra.mxu0 %v2353_v57 }
  0x1d   : > { %488 = vmatpush.bf16.msra.mxu2 %v2326_v10  ;;  %v2360_v10 = vld [vmem:[#allocation2 + $0x128] sm:$0xff] }
  0x1e   : > { %418 = vmatpush.bf16.msrb.mxu1 %v2337_v7  ;;  %622 = vmatpush.bf16.msra.mxu0 %v2352_v59  ;;  %v2362_v7 = vld [vmem:[#allocation2 + $0x138] sm:$0xff]  ;;  %v2373_v59 = vld [vmem:[#allocation2 + $0x190] sm:$0xff] }
  0x21   : > { %489 = vmatpush.bf16.msra.mxu2 %v2325_v12  ;;  %v2358_v12 = vld [vmem:[#allocation2 + $0x118] sm:$0xff] }
  0x22   : > { %419 = vmatpush.bf16.msrb.mxu1 %v2336_v9  ;;  %623 = vmatpush.bf16.msra.mxu0 %v2351_v60  ;;  %v2361_v9 = vld [vmem:[#allocation2 + $0x130] sm:$0xff]  ;;  %v2372_v60 = vld [vmem:[#allocation2 + $0x188] sm:$0xff] }
  0x25   : > { %490 = vmatpush.bf16.msra.mxu2 %v2324_v15  ;;  %v2356_v15 = vld [vmem:[#allocation2 + $0x108] sm:$0xff] }
  0x26   : > { %420 = vmatpush.bf16.msrb.mxu1 %v2335_v11  ;;  %624 = vmatpush.bf16.msra.mxu0 %v2350_v61  ;;  %v2359_v11 = vld [vmem:[#allocation2 + $0x120] sm:$0xff] }
  0x27   : > { %v2371_v61 = vld [vmem:[#allocation2 + $0x180] sm:$0xff] }
  0x29   : > { %1848 = vmatmul.msk.bf16.gmra.mxu1 %vm308_vm0, %v2563_v14  ;;  %491 = vmatpush.bf16.msra.mxu2 %v2323_v16  ;;  %v2355_v16 = vld [vmem:[#allocation2 + $0x100] sm:$0xff] }
  0x2a   : > { %421 = vmatpush.bf16.msrb.mxu1 %v2334_v13  ;;  %625 = vmatpush.bf16.msra.mxu0 %v2349_v62  ;;  %v2357_v13 = vld [vmem:[#allocation2 + $0x110] sm:$0xff] }
  0x2c   : > { %492 = vmatmul.bf16.vlgmr.msra.gmra.mxu2 %v2321_v2 }
  0x2e   : > { %422 = vmatpush.bf16.msrb.mxu1 %v2333_v17  ;;  %626 = vmatpush.bf16.msra.mxu0 %v2348_v63 }
  0x32   : > { %423 = vmatpush.bf16.msrb.mxu1 %v2332_v18 }
  0x36   : > { %424 = vmatpush.bf16.msrb.mxu1 %v2331_v19 }
  0x3c   : > { %497 = vmatmul.bf16.gmra.mxu2 %v2322_v0  ;;  %v2347_v0 = vld [vmem:[#allocation2 + $0xc0] sm:$0xff] }
  0x3d   : > { %627 = vmatpush.bf16.msra.mxu0 %v2347_v0 }
  0x41   : > { %891 = vmatpush.bf16.msrb.mxu0 %v2362_v7 }
  0x45   : > { %892 = vmatpush.bf16.msrb.mxu0 %v2361_v9 }
  0x49   : > { %893 = vmatpush.bf16.msrb.mxu0 %v2360_v10 }
  0x4d   : > { %894 = vmatpush.bf16.msrb.mxu0 %v2359_v11 }
  0x51   : > { %895 = vmatpush.bf16.msrb.mxu0 %v2358_v12 }
  0x55   : > { %896 = vmatpush.bf16.msrb.mxu0 %v2357_v13 }
  0x59   : > { %897 = vmatpush.bf16.msrb.mxu0 %v2356_v15 }
  0x5d   : > { %898 = vmatpush.bf16.msrb.mxu0 %v2355_v16 }
  0x96   : > { %v324_v20 = vpop.f32.mrf.mxu1 }
  0x9e   : > { %v326_v21 = vpop.f32.mrf.mxu1 }
  0x9f   : > { %v350_v22 = vpack.c.bf16 %v326_v21, %v324_v20  ;;  %v2457_v21 = vld [vmem:[%s2630_s4 + $0x1] ss:$0 sm:$0xff] }
  0xa1   : > { %425 = vmatmul.bf16.vlgmr.msrb.gmra.mxu1 %v350_v22 }
  0xa6   : > { %v329_v23 = vpop.f32.mrf.mxu1 }
  0xae   : > { %v331_v24 = vpop.f32.mrf.mxu1 }
  0xaf   : > { %v351_v25 = vpack.c.bf16 %v331_v24, %v329_v23  ;;  %v493_v26 = vpop.f32.mrf.mxu2 }
  0xb1   : > { %430 = vmatmul.bf16.gmra.mxu1 %v351_v25 }
  0xb7   : > { %v495_v28 = vpop.f32.mrf.mxu2 }
  0xbf   : > { %v498_v30 = vpop.f32.mrf.mxu2 }
  0xc7   : > { %v500_v35 = vpop.f32.mrf.mxu2 }
 0x11e   : > { %v426_v27 = vpop.f32.mrf.mxu1 }
 0x11f   : > { %v494_v37 = vadd.f32 %v493_v26, %v426_v27 }
 0x121   : > { %v507_v42 = vadd.f32 %v2456_v33, %v494_v37 }
 0x123   : > { %v511_v47 = vmax.f32 %v507_v42, 0.0  ;;  %v2368_v42 = vld [vmem:[#allocation2 + $0x168] sm:$0xff] }
 0x126   : > { %v428_v29 = vpop.f32.mrf.mxu1 }
 0x127   : > { %v496_v34 = vadd.f32 %v495_v28, %v428_v29 }
 0x129   : > { %v508_v40 = vadd.f32 %v2456_v33, %v496_v34 }
 0x12b   : > { %v512_v45 = vmax.f32 %v508_v40, 0.0  ;;  %v2370_v40 = vld [vmem:[#allocation2 + $0x178] sm:$0xff] }
 0x12c   : > { %824 = vmatpush.bf16.msrb.mxu2 %v2370_v40 }
 0x12d   : > { %v515_v49 = vpack.c.bf16 %v512_v45, %v511_v47  ;;  %v2365_v45 = vld [vmem:[#allocation2 + $0x150] sm:$0xff]  ;;  %v2363_v47 = vld [vmem:[#allocation2 + $0x140] sm:$0xff] }
 0x12e   : > { %v431_v31 = vpop.f32.mrf.mxu1 }
 0x12f   : > { %v499_v32 = vadd.f32 %v498_v30, %v431_v31 }
 0x131   : > { %v509_v38 = vadd.f32 %v2456_v33, %v499_v32 }
 0x133   : > { %v513_v43 = vmax.f32 %v509_v38, 0.0 }
 0x136   : > { %v433_v36 = vpop.f32.mrf.mxu1 }
 0x137   : > { %v501_v39 = vadd.f32 %v500_v35, %v433_v36 }
 0x139   : > { %v510_v41 = vadd.f32 %v2456_v33, %v501_v39 }
 0x13b   : > { %v514_v44 = vmax.f32 %v510_v41, 0.0  ;;  %v2369_v41 = vld [vmem:[#allocation2 + $0x170] sm:$0xff] }
 0x13c   : > { %825 = vmatpush.bf16.msrb.mxu2 %v2369_v41  ;;  %v2390_v41 = vld [vmem:[#allocation2 + $0x218] sm:$0xff] }
 0x13d   : > { %v516_v46 = vpack.c.bf16 %v514_v44, %v513_v43  ;;  %v2367_v43 = vld [vmem:[#allocation2 + $0x160] sm:$0xff]  ;;  %v2366_v44 = vld [vmem:[#allocation2 + $0x158] sm:$0xff] }
 0x13f   : > { %523 = vmatpush.bf16.msra.mxu3 %v516_v46 }
 0x140   : > { %826 = vmatpush.bf16.msrb.mxu2 %v2368_v42  ;;  %v2389_v42 = vld [vmem:[#allocation2 + $0x210] sm:$0xff] }
 0x143   : > { %524 = vmatpush.bf16.msra.mxu3 %v515_v49 }
 0x144   : > { %827 = vmatpush.bf16.msrb.mxu2 %v2367_v43  ;;  %v2388_v43 = vld [vmem:[#allocation2 + $0x208] sm:$0xff] }
 0x146   : > { %1913 = vmatmul.msk.bf16.vlgmr.msra.gmra.mxu3 %vm308_vm0, %v2559_v5 }
 0x147   : > { %687 = vmatpush.bf16.msrb.mxu3 %v2346_v48  ;;  %v2378_v48 = vld [vmem:[#allocation2 + $0x1b8] sm:$0xff] }
 0x148   : > { %828 = vmatpush.bf16.msrb.mxu2 %v2366_v44  ;;  %v2387_v44 = vld [vmem:[#allocation2 + $0x200] sm:$0xff] }
 0x14b   : > { %688 = vmatpush.bf16.msrb.mxu3 %v2345_v50 }
 0x14c   : > { %829 = vmatpush.bf16.msrb.mxu2 %v2365_v45 }
 0x14f   : > { %689 = vmatpush.bf16.msrb.mxu3 %v2344_v51  ;;  %v2376_v51 = vld [vmem:[#allocation2 + $0x1a8] sm:$0xff] }
 0x153   : > { %690 = vmatpush.bf16.msrb.mxu3 %v2343_v52  ;;  %v2375_v52 = vld [vmem:[#allocation2 + $0x1a0] sm:$0xff] }
 0x156   : > { %1914 = vmatmul.msk.bf16.gmra.mxu3 %vm308_vm0, %v2563_v14 }
 0x157   : > { %691 = vmatpush.bf16.msrb.mxu3 %v2342_v53 }
 0x15b   : > { %692 = vmatpush.bf16.msrb.mxu3 %v2341_v54 }
 0x15f   : > { %693 = vmatpush.bf16.msrb.mxu3 %v2340_v56 }
 0x163   : > { %694 = vmatpush.bf16.msrb.mxu3 %v2339_v58  ;;  %v2374_v58 = vld [vmem:[#allocation2 + $0x198] sm:$0xff] }
 0x166   : > { %695 = vmatmul.bf16.vlgmr.msrb.gmra.mxu3 %v515_v49  ;;  %v2377_v49 = vld [vmem:[#allocation2 + $0x1b0] sm:$0xff] }
 0x176   : > { %700 = vmatmul.bf16.gmra.mxu3 %v516_v46  ;;  %v2364_v46 = vld [vmem:[#allocation2 + $0x148] sm:$0xff] }
 0x177   : > { %830 = vmatpush.bf16.msrb.mxu2 %v2364_v46 }
 0x17b   : > { %831 = vmatpush.bf16.msrb.mxu2 %v2363_v47 }
 0x17f   : > { %1095 = vmatpush.bf16.msra.mxu2 %v2378_v48 }
 0x183   : > { %1096 = vmatpush.bf16.msra.mxu2 %v2377_v49  ;;  %v2459_v49 = vld [vmem:[%s2630_s4 + $0x3] ss:$0 sm:$0xff] }
 0x187   : > { %1097 = vmatpush.bf16.msra.mxu2 %v2376_v51 }
 0x18b   : > { %1098 = vmatpush.bf16.msra.mxu2 %v2375_v52 }
 0x18f   : > { %1099 = vmatpush.bf16.msra.mxu2 %v2374_v58 }
 0x193   : > { %1100 = vmatpush.bf16.msra.mxu2 %v2373_v59 }
 0x197   : > { %1101 = vmatpush.bf16.msra.mxu2 %v2372_v60 }
 0x19b   : > { %1102 = vmatpush.bf16.msra.mxu2 %v2371_v61 }
 0x1c9   : > { %v526_v1 = vpop.f32.mrf.mxu3 }
 0x1d1   : > { %v528_v2 = vpop.f32.mrf.mxu3 }
 0x1d2   : > { %v553_v3 = vpack.c.bf16 %v528_v2, %v526_v1  ;;  %v2458_v2 = vld [vmem:[%s2630_s4 + $0x2] ss:$0 sm:$0xff] }
 0x1d4   : > { %628 = vmatmul.bf16.vlgmr.msra.gmra.mxu0 %v553_v3 }
 0x1d9   : > { %v531_v4 = vpop.f32.mrf.mxu3 }
 0x1e1   : > { %v533_v6 = vpop.f32.mrf.mxu3 }
 0x1e2   : > { %v554_v8 = vpack.c.bf16 %v533_v6, %v531_v4 }
 0x1e4   : > { %633 = vmatmul.bf16.gmra.mxu0 %v554_v8 }
 0x1e9   : > { %v696_v17 = vpop.f32.mrf.mxu3 }
 0x1f1   : > { %v698_v19 = vpop.f32.mrf.mxu3 }
 0x1f9   : > { %v701_v28 = vpop.f32.mrf.mxu3 }
 0x201   : > { %v703_v32 = vpop.f32.mrf.mxu3 }
 0x251   : > { %v629_v18 = vpop.f32.mrf.mxu0 }
 0x252   : > { %v697_v20 = vadd.f32 %v696_v17, %v629_v18 }
 0x254   : > { %v711_v23 = vadd.f32 %v2457_v21, %v697_v20 }
 0x256   : > { %v715_v26 = vmax.f32 %v711_v23, 0.0  ;;  %v2386_v23 = vld [vmem:[#allocation2 + $0x1f8] sm:$0xff] }
 0x259   : > { %v631_v22 = vpop.f32.mrf.mxu0 }
 0x25a   : > { %v699_v24 = vadd.f32 %v698_v19, %v631_v22 }
 0x25c   : > { %v712_v25 = vadd.f32 %v2457_v21, %v699_v24  ;;  %v2385_v24 = vld [vmem:[#allocation2 + $0x1f0] sm:$0xff] }
 0x25e   : > { %v716_v27 = vmax.f32 %v712_v25, 0.0  ;;  %v2384_v25 = vld [vmem:[#allocation2 + $0x1e8] sm:$0xff] }
 0x260   : > { %v719_v29 = vpack.c.bf16 %v716_v27, %v715_v26  ;;  %v2383_v26 = vld [vmem:[#allocation2 + $0x1e0] sm:$0xff]  ;;  %v2382_v27 = vld [vmem:[#allocation2 + $0x1d8] sm:$0xff] }
 0x261   : > { %v634_v30 = vpop.f32.mrf.mxu0 }
 0x262   : > { %899 = vmatmul.bf16.vlgmr.msrb.gmra.mxu0 %v719_v29  ;;  %v702_v31 = vadd.f32 %v701_v28, %v634_v30  ;;  %v2381_v28 = vld [vmem:[#allocation2 + $0x1d0] sm:$0xff]  ;;  %v2379_v30 = vld [vmem:[#allocation2 + $0x1c0] sm:$0xff] }
 0x264   : > { %v713_v34 = vadd.f32 %v2457_v21, %v702_v31  ;;  %v2394_v31 = vld [vmem:[#allocation2 + $0x238] sm:$0xff] }
 0x266   : > { %v717_v37 = vmax.f32 %v713_v34, 0.0  ;;  %v2392_v34 = vld [vmem:[#allocation2 + $0x228] sm:$0xff] }
 0x269   : > { %v636_v33 = vpop.f32.mrf.mxu0 }
 0x26a   : > { %v704_v35 = vadd.f32 %v703_v32, %v636_v33  ;;  %v2393_v32 = vld [vmem:[#allocation2 + $0x230] sm:$0xff] }
 0x26c   : > { %v714_v36 = vadd.f32 %v2457_v21, %v704_v35  ;;  %v2391_v35 = vld [vmem:[#allocation2 + $0x220] sm:$0xff] }
 0x26e   : > { %v718_v38 = vmax.f32 %v714_v36, 0.0 }
 0x270   : > { %v720_v39 = vpack.c.bf16 %v718_v38, %v717_v37 }
 0x272   : > { %727 = vmatpush.bf16.msra.mxu1 %v720_v39  ;;  %904 = vmatmul.bf16.gmra.mxu0 %v720_v39 }
 0x276   : > { %728 = vmatpush.bf16.msra.mxu1 %v719_v29  ;;  %v2380_v29 = vld [vmem:[#allocation2 + $0x1c8] sm:$0xff] }
 0x279   : > { %1980 = vmatmul.msk.bf16.vlgmr.msra.gmra.mxu1 %vm308_vm0, %v2559_v5 }
 0x27a   : > { %1028 = vmatpush.bf16.msrb.mxu1 %v2386_v23 }
 0x27e   : > { %1029 = vmatpush.bf16.msrb.mxu1 %v2385_v24  ;;  %v2406_v24 = vld [vmem:[#allocation2 + $0x298] sm:$0xff] }
 0x282   : > { %1030 = vmatpush.bf16.msrb.mxu1 %v2384_v25  ;;  %v2405_v25 = vld [vmem:[#allocation2 + $0x290] sm:$0xff] }
 0x286   : > { %1031 = vmatpush.bf16.msrb.mxu1 %v2383_v26  ;;  %v2404_v26 = vld [vmem:[#allocation2 + $0x288] sm:$0xff] }
 0x289   : > { %1981 = vmatmul.msk.bf16.gmra.mxu1 %vm308_vm0, %v2563_v14 }
 0x28a   : > { %1032 = vmatpush.bf16.msrb.mxu1 %v2382_v27  ;;  %v2403_v27 = vld [vmem:[#allocation2 + $0x280] sm:$0xff] }
 0x28e   : > { %1033 = vmatpush.bf16.msrb.mxu1 %v2381_v28 }
 0x292   : > { %1034 = vmatpush.bf16.msrb.mxu1 %v2380_v29 }
 0x296   : > { %1035 = vmatpush.bf16.msrb.mxu1 %v2379_v30 }
 0x29a   : > { %1299 = vmatpush.bf16.msra.mxu1 %v2394_v31 }
 0x29e   : > { %1300 = vmatpush.bf16.msra.mxu1 %v2393_v32  ;;  %v2460_v32 = vld [vmem:[%s2630_s4 + $0x4] ss:$0 sm:$0xff] }
 0x2a2   : > { %1301 = vmatpush.bf16.msra.mxu1 %v2392_v34 }
 0x2a6   : > { %1302 = vmatpush.bf16.msra.mxu1 %v2391_v35 }
 0x2aa   : > { %1303 = vmatpush.bf16.msra.mxu1 %v2390_v41 }
 0x2ae   : > { %1304 = vmatpush.bf16.msra.mxu1 %v2389_v42 }
 0x2b2   : > { %1305 = vmatpush.bf16.msra.mxu1 %v2388_v43 }
 0x2b6   : > { %1306 = vmatpush.bf16.msra.mxu1 %v2387_v44 }
 0x2df   : > { %v900_v62 = vpop.f32.mrf.mxu0 }
 0x2e7   : > { %v902_v0 = vpop.f32.mrf.mxu0 }
 0x2ef   : > { %v905_v10 = vpop.f32.mrf.mxu0 }
 0x2f6   : > { %v730_v50 = vpop.f32.mrf.mxu1 }
 0x2f7   : > { %v907_v15 = vpop.f32.mrf.mxu0 }
 0x2fe   : > { %v732_v53 = vpop.f32.mrf.mxu1 }
 0x2ff   : > { %v757_v54 = vpack.c.bf16 %v732_v53, %v730_v50 }
 0x301   : > { %832 = vmatmul.bf16.vlgmr.msrb.gmra.mxu2 %v757_v54 }
 0x306   : > { %v735_v55 = vpop.f32.mrf.mxu1 }
 0x30e   : > { %v737_v56 = vpop.f32.mrf.mxu1 }
 0x30f   : > { %v758_v57 = vpack.c.bf16 %v737_v56, %v735_v55 }
 0x311   : > { %837 = vmatmul.bf16.gmra.mxu2 %v758_v57 }
 0x384   : > { %v833_v63 = vpop.f32.mrf.mxu2 }
 0x385   : > { %v901_v1 = vadd.f32 %v900_v62, %v833_v63 }
 0x387   : > { %v915_v4 = vadd.f32 %v2458_v2, %v901_v1 }
 0x389   : > { %v919_v8 = vmax.f32 %v915_v4, 0.0  ;;  %v2402_v4 = vld [vmem:[#allocation2 + $0x278] sm:$0xff] }
 0x38c   : > { %v835_v3 = vpop.f32.mrf.mxu2 }
 0x38d   : > { %v903_v6 = vadd.f32 %v902_v0, %v835_v3 }
 0x38f   : > { %v916_v7 = vadd.f32 %v2458_v2, %v903_v6  ;;  %v2401_v6 = vld [vmem:[#allocation2 + $0x270] sm:$0xff] }
 0x391   : > { %v920_v9 = vmax.f32 %v916_v7, 0.0  ;;  %v2400_v7 = vld [vmem:[#allocation2 + $0x268] sm:$0xff] }
 0x393   : > { %v923_v11 = vpack.c.bf16 %v920_v9, %v919_v8  ;;  %v2399_v8 = vld [vmem:[#allocation2 + $0x260] sm:$0xff]  ;;  %v2398_v9 = vld [vmem:[#allocation2 + $0x258] sm:$0xff] }
 0x394   : > { %v838_v12 = vpop.f32.mrf.mxu2 }
 0x395   : > { %1103 = vmatmul.bf16.vlgmr.msra.gmra.mxu2 %v923_v11  ;;  %v906_v13 = vadd.f32 %v905_v10, %v838_v12  ;;  %v2397_v10 = vld [vmem:[#allocation2 + $0x250] sm:$0xff]  ;;  %v2395_v12 = vld [vmem:[#allocation2 + $0x240] sm:$0xff] }
 0x397   : > { %v917_v17 = vadd.f32 %v2458_v2, %v906_v13  ;;  %v2410_v13 = vld [vmem:[#allocation2 + $0x2b8] sm:$0xff] }
 0x399   : > { %v921_v20 = vmax.f32 %v917_v17, 0.0  ;;  %v2408_v17 = vld [vmem:[#allocation2 + $0x2a8] sm:$0xff] }
 0x39c   : > { %v840_v16 = vpop.f32.mrf.mxu2 }
 0x39d   : > { %v908_v18 = vadd.f32 %v907_v15, %v840_v16  ;;  %v2409_v15 = vld [vmem:[#allocation2 + $0x2b0] sm:$0xff] }
 0x39f   : > { %v918_v19 = vadd.f32 %v2458_v2, %v908_v18  ;;  %v2407_v18 = vld [vmem:[#allocation2 + $0x2a0] sm:$0xff] }
 0x3a1   : > { %v922_v21 = vmax.f32 %v918_v19, 0.0 }
 0x3a3   : > { %v924_v22 = vpack.c.bf16 %v922_v21, %v921_v20 }
 0x3a5   : > { %931 = vmatpush.bf16.msra.mxu3 %v924_v22  ;;  %1108 = vmatmul.bf16.gmra.mxu2 %v924_v22 }
 0x3a9   : > { %932 = vmatpush.bf16.msra.mxu3 %v923_v11  ;;  %v2396_v11 = vld [vmem:[#allocation2 + $0x248] sm:$0xff] }
 0x3ac   : > { %2047 = vmatmul.msk.bf16.vlgmr.msra.gmra.mxu3 %vm308_vm0, %v2559_v5 }
 0x3ad   : > { %1232 = vmatpush.bf16.msrb.mxu3 %v2402_v4  ;;  %v2425_v4 = vld [vmem:[#allocation2 + $0x330] sm:$0xff] }
 0x3b1   : > { %1233 = vmatpush.bf16.msrb.mxu3 %v2401_v6  ;;  %v2424_v6 = vld [vmem:[#allocation2 + $0x328] sm:$0xff] }
 0x3b5   : > { %1234 = vmatpush.bf16.msrb.mxu3 %v2400_v7 }
 0x3b9   : > { %1235 = vmatpush.bf16.msrb.mxu3 %v2399_v8 }
 0x3bc   : > { %2048 = vmatmul.msk.bf16.gmra.mxu3 %vm308_vm0, %v2563_v14 }
 0x3bd   : > { %1236 = vmatpush.bf16.msrb.mxu3 %v2398_v9  ;;  %v2423_v9 = vld [vmem:[#allocation2 + $0x320] sm:$0xff] }
 0x3c1   : > { %1237 = vmatpush.bf16.msrb.mxu3 %v2397_v10  ;;  %v2422_v10 = vld [vmem:[#allocation2 + $0x318] sm:$0xff] }
 0x3c5   : > { %1238 = vmatpush.bf16.msrb.mxu3 %v2396_v11 }
 0x3c9   : > { %1239 = vmatpush.bf16.msrb.mxu3 %v2395_v12 }
 0x3cd   : > { %1503 = vmatpush.bf16.msra.mxu3 %v2410_v13 }
 0x3d1   : > { %1504 = vmatpush.bf16.msra.mxu3 %v2409_v15  ;;  %v2421_v15 = vld [vmem:[#allocation2 + $0x310] sm:$0xff] }
 0x3d5   : > { %1505 = vmatpush.bf16.msra.mxu3 %v2408_v17 }
 0x3d9   : > { %1506 = vmatpush.bf16.msra.mxu3 %v2407_v18 }
 0x3dd   : > { %1507 = vmatpush.bf16.msra.mxu3 %v2406_v24 }
 0x3e1   : > { %1508 = vmatpush.bf16.msra.mxu3 %v2405_v25 }
 0x3e5   : > { %1509 = vmatpush.bf16.msra.mxu3 %v2404_v26 }
 0x3e9   : > { %1510 = vmatpush.bf16.msra.mxu3 %v2403_v27 }
 0x418   : > { %v1104_v45 = vpop.f32.mrf.mxu2 }
 0x420   : > { %v1106_v47 = vpop.f32.mrf.mxu2 }
 0x428   : > { %v1109_v56 = vpop.f32.mrf.mxu2 }
 0x42f   : > { %v934_v33 = vpop.f32.mrf.mxu3 }
 0x430   : > { %v1111_v60 = vpop.f32.mrf.mxu2 }
 0x437   : > { %v936_v36 = vpop.f32.mrf.mxu3 }
 0x438   : > { %v961_v37 = vpack.c.bf16 %v936_v36, %v934_v33 }
 0x43a   : > { %1036 = vmatmul.bf16.vlgmr.msrb.gmra.mxu1 %v961_v37 }
 0x43f   : > { %v939_v38 = vpop.f32.mrf.mxu3 }
 0x447   : > { %v941_v39 = vpop.f32.mrf.mxu3 }
 0x448   : > { %v962_v40 = vpack.c.bf16 %v941_v39, %v939_v38 }
 0x44a   : > { %1041 = vmatmul.bf16.gmra.mxu1 %v962_v40 }
 0x4b7   : > { %v1037_v46 = vpop.f32.mrf.mxu1 }
 0x4b8   : > { %v1105_v48 = vadd.f32 %v1104_v45, %v1037_v46 }
 0x4ba   : > { %v1119_v51 = vadd.f32 %v2459_v49, %v1105_v48 }
 0x4bc   : > { %v1123_v54 = vmax.f32 %v1119_v51, 0.0  ;;  %v2418_v51 = vld [vmem:[#allocation2 + $0x2f8] sm:$0xff] }
 0x4bf   : > { %v1039_v50 = vpop.f32.mrf.mxu1 }
 0x4c0   : > { %v1107_v52 = vadd.f32 %v1106_v47, %v1039_v50 }
 0x4c2   : > { %v1120_v53 = vadd.f32 %v2459_v49, %v1107_v52  ;;  %v2417_v52 = vld [vmem:[#allocation2 + $0x2f0] sm:$0xff] }
 0x4c4   : > { %v1124_v55 = vmax.f32 %v1120_v53, 0.0  ;;  %v2416_v53 = vld [vmem:[#allocation2 + $0x2e8] sm:$0xff] }
 0x4c6   : > { %v1127_v57 = vpack.c.bf16 %v1124_v55, %v1123_v54  ;;  %v2415_v54 = vld [vmem:[#allocation2 + $0x2e0] sm:$0xff]  ;;  %v2414_v55 = vld [vmem:[#allocation2 + $0x2d8] sm:$0xff] }
 0x4c7   : > { %v1042_v58 = vpop.f32.mrf.mxu1 }
 0x4c8   : > { %1307 = vmatmul.bf16.vlgmr.msra.gmra.mxu1 %v1127_v57  ;;  %v1110_v59 = vadd.f32 %v1109_v56, %v1042_v58  ;;  %v2413_v56 = vld [vmem:[#allocation2 + $0x2d0] sm:$0xff]  ;;  %v2411_v58 = vld [vmem:[#allocation2 + $0x2c0] sm:$0xff] }
 0x4ca   : > { %v1121_v62 = vadd.f32 %v2459_v49, %v1110_v59 }
 0x4cc   : > { %v1125_v1 = vmax.f32 %v1121_v62, 0.0 }
 0x4cf   : > { %v1044_v61 = vpop.f32.mrf.mxu1 }
 0x4d0   : > { %v1112_v63 = vadd.f32 %v1111_v60, %v1044_v61 }
 0x4d2   : > { %v1122_v0 = vadd.f32 %v2459_v49, %v1112_v63 }
 0x4d4   : > { %v1126_v2 = vmax.f32 %v1122_v0, 0.0 }
 0x4d6   : > { %v1128_v3 = vpack.c.bf16 %v1126_v2, %v1125_v1  ;;  %v2426_v2 = vld [vmem:[#allocation2 + $0x338] sm:$0xff] }
 0x4d8   : > { %1135 = vmatpush.bf16.msra.mxu0 %v1128_v3  ;;  %1312 = vmatmul.bf16.gmra.mxu1 %v1128_v3 }
 0x4dc   : > { %1136 = vmatpush.bf16.msra.mxu0 %v1127_v57  ;;  %v2412_v57 = vld [vmem:[#allocation2 + $0x2c8] sm:$0xff] }
 0x4df   : > { %2114 = vmatmul.msk.bf16.vlgmr.msra.gmra.mxu0 %vm308_vm0, %v2559_v5 }
 0x4e0   : > { %1436 = vmatpush.bf16.msrb.mxu0 %v2418_v51 }
 0x4e4   : > { %1437 = vmatpush.bf16.msrb.mxu0 %v2417_v52 }
 0x4e8   : > { %1438 = vmatpush.bf16.msrb.mxu0 %v2416_v53 }
 0x4ec   : > { %1439 = vmatpush.bf16.msrb.mxu0 %v2415_v54 }
 0x4ef   : > { %2115 = vmatmul.msk.bf16.gmra.mxu0 %vm308_vm0, %v2563_v14 }
 0x4f0   : > { %1440 = vmatpush.bf16.msrb.mxu0 %v2414_v55 }
 0x4f4   : > { %1441 = vmatpush.bf16.msrb.mxu0 %v2413_v56 }
 0x4f8   : > { %1442 = vmatpush.bf16.msrb.mxu0 %v2412_v57 }
 0x4fc   : > { %1443 = vmatpush.bf16.msrb.mxu0 %v2411_v58 }
 0x545   : > { %v1308_v28 = vpop.f32.mrf.mxu1 }
 0x54d   : > { %v1310_v30 = vpop.f32.mrf.mxu1 }
 0x555   : > { %v1313_v39 = vpop.f32.mrf.mxu1 }
 0x55c   : > { %v1138_v16 = vpop.f32.mrf.mxu0 }
 0x55d   : > { %v1315_v43 = vpop.f32.mrf.mxu1 }
 0x564   : > { %v1140_v19 = vpop.f32.mrf.mxu0 }
 0x565   : > { %v1165_v20 = vpack.c.bf16 %v1140_v19, %v1138_v16  ;;  %v2461_v16 = vld [vmem:[%s2630_s4 + $0x5] ss:$0 sm:$0xff] }
 0x567   : > { %1240 = vmatmul.bf16.vlgmr.msrb.gmra.mxu3 %v1165_v20 }
 0x56c   : > { %v1143_v21 = vpop.f32.mrf.mxu0 }
 0x574   : > { %v1145_v22 = vpop.f32.mrf.mxu0 }
 0x575   : > { %v1166_v23 = vpack.c.bf16 %v1145_v22, %v1143_v21  ;;  %v2420_v22 = vld [vmem:[#allocation2 + $0x308] sm:$0xff] }
 0x577   : > { %1245 = vmatmul.bf16.gmra.mxu3 %v1166_v23 }
 0x5ea   : > { %v1241_v29 = vpop.f32.mrf.mxu3 }
 0x5eb   : > { %v1309_v31 = vadd.f32 %v1308_v28, %v1241_v29  ;;  %v1535_v29 = vld [vmem:[%s272_s26] sm:$0xff] }
 0x5ed   : > { %v1323_v34 = vadd.f32 %v2460_v32, %v1309_v31  ;;  %v2434_v31 = vld [vmem:[#allocation2 + $0x378] sm:$0xff] }
 0x5ee   : > { %1715 = vmatpush.bf16.msra.mxu0 %v2434_v31 }
 0x5ef   : > { %v1327_v37 = vmax.f32 %v1323_v34, 0.0  ;;  %v2431_v34 = vld [vmem:[#allocation2 + $0x360] sm:$0xff] }
 0x5f2   : > { %v1243_v33 = vpop.f32.mrf.mxu3 }
 0x5f3   : > { %v1311_v35 = vadd.f32 %v1310_v30, %v1243_v33  ;;  %v2419_v30 = vld [vmem:[#allocation2 + $0x300] sm:$0xff]  ;;  %v2432_v33 = vld [vmem:[#allocation2 + $0x368] sm:$0xff] }
 0x5f5   : > { %v1324_v36 = vadd.f32 %v2460_v32, %v1311_v35  ;;  %v2430_v35 = vld [vmem:[#allocation2 + $0x358] sm:$0xff] }
 0x5f7   : > { %v1328_v38 = vmax.f32 %v1324_v36, 0.0  ;;  %v2429_v36 = vld [vmem:[#allocation2 + $0x350] sm:$0xff] }
 0x5f9   : > { %v1331_v40 = vpack.c.bf16 %v1328_v38, %v1327_v37 }
 0x5fa   : > { %v1246_v41 = vpop.f32.mrf.mxu3 }
 0x5fb   : > { %1511 = vmatmul.bf16.vlgmr.msra.gmra.mxu3 %v1331_v40  ;;  %v1314_v42 = vadd.f32 %v1313_v39, %v1246_v41  ;;  %v2428_v39 = vld [vmem:[#allocation2 + $0x348] sm:$0xff]  ;;  %v2462_v41 = vld [vmem:[%s2630_s4 + $0x6] ss:$0 sm:$0xff] }
 0x5fd   : > { %v1325_v45 = vadd.f32 %v2460_v32, %v1314_v42 }
 0x5ff   : > { %v1329_v48 = vmax.f32 %v1325_v45, 0.0 }
 0x602   : > { %v1248_v44 = vpop.f32.mrf.mxu3 }
 0x603   : > { %v1316_v46 = vadd.f32 %v1315_v43, %v1248_v44 }
 0x605   : > { %v1326_v47 = vadd.f32 %v2460_v32, %v1316_v46  ;;  %v2433_v32 = vld [vmem:[#allocation2 + $0x370] sm:$0xff] }
 0x606   : > { %1716 = vmatpush.bf16.msra.mxu0 %v2433_v32 }
 0x607   : > { %v1330_v49 = vmax.f32 %v1326_v47, 0.0  ;;  %v2463_v47 = vld [vmem:[%s2630_s4 + $0x7] ss:$0 sm:$0xff] }
 0x609   : > { %v1332_v50 = vpack.c.bf16 %v1330_v49, %v1329_v48 }
 0x60a   : > { %1717 = vmatpush.bf16.msra.mxu0 %v2432_v33 }
 0x60b   : > { %1339 = vmatpush.bf16.msrb.mxu2 %v1332_v50  ;;  %1516 = vmatmul.bf16.gmra.mxu3 %v1332_v50 }
 0x60e   : > { %1718 = vmatpush.bf16.msra.mxu0 %v2431_v34 }
 0x60f   : > { %1340 = vmatpush.bf16.msrb.mxu2 %v1331_v40  ;;  %v2427_v40 = vld [vmem:[#allocation2 + $0x340] sm:$0xff] }
 0x612   : > { %2181 = vmatmul.msk.bf16.vlgmr.msrb.gmra.mxu2 %vm308_vm0, %v2559_v5  ;;  %1719 = vmatpush.bf16.msra.mxu0 %v2430_v35 }
 0x613   : > { %1630 = vmatpush.bf16.msra.mxu2 %v2426_v2 }
 0x616   : > { %1720 = vmatpush.bf16.msra.mxu0 %v2429_v36 }
 0x617   : > { %1631 = vmatpush.bf16.msra.mxu2 %v2425_v4 }
 0x61a   : > { %1721 = vmatpush.bf16.msra.mxu0 %v2428_v39 }
 0x61b   : > { %1632 = vmatpush.bf16.msra.mxu2 %v2424_v6 }
 0x61e   : > { %1722 = vmatpush.bf16.msra.mxu0 %v2427_v40 }
 0x61f   : > { %1633 = vmatpush.bf16.msra.mxu2 %v2423_v9 }
 0x622   : > { %2182 = vmatmul.msk.bf16.gmra.mxu2 %vm308_vm0, %v2563_v14 }
 0x623   : > { %1634 = vmatpush.bf16.msra.mxu2 %v2422_v10 }
 0x627   : > { %1635 = vmatpush.bf16.msra.mxu2 %v2421_v15 }
 0x62b   : > { %1636 = vmatpush.bf16.msra.mxu2 %v2420_v22 }
 0x62f   : > { %1637 = vmatpush.bf16.msra.mxu2 %v2419_v30 }
 0x67e   : > { %v1512_v63 = vpop.f32.mrf.mxu3 }
 0x686   : > { %v1514_v1 = vpop.f32.mrf.mxu3 }
 0x68e   : > { %v1517_v7 = vpop.f32.mrf.mxu3 }
 0x695   : > { %v1342_v5 = vpop.f32.mrf.mxu2 }
 0x696   : > { %v1519_v12 = vpop.f32.mrf.mxu3 }
 0x69d   : > { %v1344_v59 = vpop.f32.mrf.mxu2 }
 0x69e   : > { %v1369_v60 = vpack.c.bf16 %v1344_v59, %v1342_v5 }
 0x6a0   : > { %1444 = vmatmul.bf16.vlgmr.msrb.gmra.mxu0 %v1369_v60 }
 0x6a5   : > { %v1347_v14 = vpop.f32.mrf.mxu2 }
 0x6ad   : > { %v1349_v61 = vpop.f32.mrf.mxu2 }
 0x6ae   : > { %v1370_v62 = vpack.c.bf16 %v1349_v61, %v1347_v14 }
 0x6b0   : > { %1449 = vmatmul.bf16.gmra.mxu0 %v1370_v62 }
 0x71d   : > { %v1445_v0 = vpop.f32.mrf.mxu0 }
 0x71e   : > { %v1513_v19 = vadd.f32 %v1512_v63, %v1445_v0 }
 0x720   : > { %v1527_v25 = vadd.f32 %v2461_v16, %v1513_v19 }
 0x722   : > { %v1531_v28 = vmax.f32 %v1527_v25, 0.0 }
 0x725   : > { %v1447_v3 = vpop.f32.mrf.mxu0 }
 0x726   : > { %v1515_v17 = vadd.f32 %v1514_v1, %v1447_v3 }
 0x728   : > { %v1528_v23 = vadd.f32 %v2461_v16, %v1515_v17 }
 0x72a   : > { %v1532_v27 = vmax.f32 %v1528_v23, 0.0 }
 0x72d   : > { %v1450_v8 = vpop.f32.mrf.mxu0 }
 0x72e   : > { %v1518_v11 = vadd.f32 %v1517_v7, %v1450_v8 }
 0x730   : > { %v1529_v20 = vadd.f32 %v2461_v16, %v1518_v11 }
 0x732   : > { %v1533_v26 = vmax.f32 %v1529_v20, 0.0 }
 0x735   : > { %v1452_v13 = vpop.f32.mrf.mxu0 }
 0x736   : > { %v1520_v18 = vadd.f32 %v1519_v12, %v1452_v13 }
 0x738   : > { %v1530_v21 = vadd.f32 %v2461_v16, %v1520_v18 }
 0x73a   : > { %v1534_v24 = vmax.f32 %v1530_v21, 0.0 }
 0x73c   : > { %1551 = vmatpush.msrb.mxu1 %v1534_v24 }
 0x73e   : > { %1552 = vmatpush.msrb.mxu1 %v1533_v26 }
 0x740   : > { %1553 = vmatpush.msrb.mxu1 %v1532_v27 }
 0x742   : > { %1554 = vmatpush.msrb.mxu1 %v1531_v28 }
 0x743   : > { %2248 = vmatmul.msk.f32.vlgmr.msrb.gmra.mxu1 %vm308_vm0, %v1535_v29 }
 0x7c0   : > { %v1556_v37 = vpop.f32.mrf.mxu1 }
 0x7c1   : > { %v1559_v38 = vpack.c.bf16 %v1556_v37, %v1556_v37 }
 0x7c3   : > { %1638 = vmatmul.bf16.vlgmr.msra.gmra.mxu2 %v1559_v38 }
 0x846   : > { %v1639_v42 = vpop.f32.mrf.mxu2 }
 0x847   : > { %v1640_v43 = vadd.f32 %v2462_v41, %v1639_v42 }
 0x849   : > { %v1643_v44 = vmax.f32 %v1640_v43, 0.0 }
 0x84b   : > { %v1644_v45 = vpack.c.bf16 %v1643_v44, %v1643_v44 }
 0x84d   : > { %1723 = vmatmul.bf16.vlgmr.msra.gmra.mxu0 %v1644_v45 }
 0x84e   : > { %v1641_v46 = vpop.f32.mrf.mxu2 }
 0x8ca   : > { %v1724_v48 = vpop.f32.mrf.mxu0 }
 0x8cb   : > { %v1725_v49 = vadd.f32 %v2463_v47, %v1724_v48 }
 0x8cd   : > { %1728 = vst [vmem:[%s276_s8] sm:$0xff] %v1725_v49 }
 0x8d2   : > { %v1726_v50 = vpop.f32.mrf.mxu0 }
 0x8d3 PF: > { %s16_s18 = sadd.s32 1, %s2504_s18  }
 0x8d4   : > { %p13_p7 = scmp.ge.s32.totalorder %s16_s18, 6  }
 0x8d6   :  { %15 = sbr.rel (!%p13_p7) target bundleno = 1 (0x1), region = 101 }
 0x8db   :  { %1748 = vsyncpa [#allocation3], 1 }
 0x8dc   :  { %1750 = vsyncpa [#allocation3 + $0x1], 1 }

</bundles_post_ra>
